<compile_context>
chip_gen: v7x
topology: tpu7x:2x2x1
jax: 0.10.0
libtpu: 0.0.40
codegen_flags: <defaults>
</compile_context>

<pallas_src>
import math

import jax
import jax.numpy as jnp
from jax.experimental import pallas as pl
from jax.experimental.pallas import tpu as pltpu

_LANES = 128


def _interp_kernel(coef_ref, x_ref, n_ref, o_ref):
    # coef_ref: SMEM f32 [2, B]   (row 0: 1 - t/sigma_max, row 1: t)
    # x_ref / n_ref / o_ref: VMEM [1, rows_tile, 128] tiles of one batch's slab.
    b = pl.program_id(0)
    a = coef_ref[0, b]    # f32 scalar, broadcast over the tile
    tb = coef_ref[1, b]   # f32 scalar
    o_ref[...] = (x_ref[...] * a + tb * n_ref[...]).astype(o_ref.dtype)


def _round_up(v, m):
    return ((v + m - 1) // m) * m


def linear_interpolant_forward(x, t, noise, *, sigma_max, max_tile_bytes=2 << 20):
    """x, noise: [B, ...]; t: scalar or per-batch, broadcastable to [B]."""
    orig_shape = x.shape
    B = orig_shape[0]
    N = math.prod(orig_shape[1:])
    dtype = x.dtype
    itemsize = jnp.dtype(dtype).itemsize

    # Sublane granularity: 8 rows for 32-bit, 16 for bf16, 32 for int8/fp8.
    sub = 8 * (4 // itemsize)

    rows = pl.cdiv(N, _LANES)
    rows_min = _round_up(rows, sub)
    # Largest row tile (multiple of `sub`) whose payload stays under max_tile_bytes.
    max_rows = max(sub, (max_tile_bytes // (_LANES * itemsize)) // sub * sub)
    num_tiles = pl.cdiv(rows_min, max_rows)
    rows_tile = _round_up(pl.cdiv(rows_min, num_tiles), sub)
    rows_total = rows_tile * num_tiles
    n_pad = rows_total * _LANES

    x2 = x.reshape(B, N)
    n2 = noise.reshape(B, N)
    if n_pad != N:
        pad = ((0, 0), (0, n_pad - N))
        x2 = jnp.pad(x2, pad)
        n2 = jnp.pad(n2, pad)
    x3 = x2.reshape(B, rows_total, _LANES)
    n3 = n2.reshape(B, rows_total, _LANES)

    # Per-batch blend coefficients, computed once in f32 (also helps bf16 inputs).
    t_b = jnp.broadcast_to(jnp.asarray(t, jnp.float32).reshape(-1), (B,))
    coef = jnp.stack([1.0 - t_b / jnp.float32(sigma_max), t_b], axis=0)  # [2, B] f32

    tile_bytes = rows_tile * _LANES * itemsize
    # 3 streams x 2 pipeline buffers, plus headroom; keep under v7x's 64 MiB physical.
    vmem_limit = int(min(max(4 * 3 * tile_bytes, 16 << 20), 48 << 20))

    grid = (B, rows_total // rows_tile)
    tile_spec = pl.BlockSpec((1, rows_tile, _LANES), lambda b, j, coef: (b, j, 0))

    out = pl.pallas_call(
        _interp_kernel,
        out_shape=jax.ShapeDtypeStruct((B, rows_total, _LANES), dtype),
        grid_spec=pltpu.PrefetchScalarGridSpec(
            num_scalar_prefetch=1,
            grid=grid,
            in_specs=[tile_spec, tile_spec],
            out_specs=pl.BlockSpec((1, rows_tile, _LANES),
                                   lambda b, j, coef: (b, j, 0)),
        ),
        compiler_params=pltpu.CompilerParams(
            dimension_semantics=("parallel", "parallel"),
            vmem_limit_bytes=vmem_limit),
        cost_estimate=pl.CostEstimate(
            flops=3 * B * N,
            transcendentals=0,
            bytes_accessed=3 * B * N * itemsize),
    )(coef, x3, n3)

    return out.reshape(B, n_pad)[:, :N].reshape(orig_shape)


class LinearInterpolantKernelJAX:
    """JAX/Pallas port of the PyTorch LinearInterpolantKernel (forward in-kernel)."""

    def __init__(self, sigma_min, sigma_max, sigma_data):
        self.sigma_min = sigma_min
        self.sigma_max = sigma_max
        self.sigma_data = sigma_data

    def forward(self, x, t, noise):
        return linear_interpolant_forward(x, t, noise, sigma_max=self.sigma_max)

    # Pure-JAX scalar helpers (no hot path — plain glue, same math as PyTorch).
    def get_scaling_factors_bc(self, sigma):
        scaling_term = 1 - sigma / self.sigma_max
        scaling_term_bc = 1 - (sigma - self.sigma_min) / (self.sigma_max - self.sigma_min)
        c_in = 1 / jnp.sqrt(self.sigma_data ** 2 * scaling_term ** 2 + sigma ** 2)
        c_skip = self.sigma_data ** 2 * scaling_term_bc / (
            (sigma - self.sigma_min) ** 2 + self.sigma_data ** 2 * scaling_term_bc ** 2)
        c_out = (sigma - self.sigma_min) * self.sigma_data * c_in
        return (c_in, c_skip, c_out)

    def get_scaling_factors(self, sigma):
        scaling_term = 1 - sigma / self.sigma_max
        c_in = 1 / jnp.sqrt(self.sigma_data ** 2 * scaling_term ** 2 + sigma ** 2)
        c_skip = self.sigma_data ** 2 * scaling_term / (
            sigma ** 2 + self.sigma_data ** 2 * scaling_term ** 2)
        c_out = sigma * self.sigma_data * c_in
        return (c_in, c_skip, c_out)


if __name__ == "__main__":
    key = jax.random.PRNGKey(0)
    kx, kt, kn = jax.random.split(key, 3)

    B, C, H, W = 2, 4, 16, 16
    sigma_min, sigma_max, sigma_data = 0.002, 80.0, 0.5

    x = jax.random.normal(kx, (B, C, H, W), dtype=jnp.float32)
    noise = jax.random.normal(kn, (B, C, H, W), dtype=jnp.float32)
    t = jax.random.uniform(kt, (B,), dtype=jnp.float32) * sigma_max  # per-batch sigma

    module = LinearInterpolantKernelJAX(sigma_min, sigma_max, sigma_data)
    out = module.forward(x, t, noise)
    out = jax.block_until_ready(out)

    # Reference (pure JAX, matches PyTorch broadcasting of t as [B,1,1,1]).
    t_bcast = t.reshape(B, 1, 1, 1)
    ref = x * (1.0 - t_bcast / sigma_max) + t_bcast * noise

    assert out.shape == x.shape and out.dtype == x.dtype
    assert jnp.allclose(out, ref, rtol=1e-6, atol=1e-6)
    print("KERNEL_OK")
</pallas_src>

<mosaic_0001>
module attributes {stable_mosaic.version = 11 : i64} {
  func.func @_interp_kernel(%arg0: i32, %arg1: i32, %arg2: memref<2x2xf32, #tpu.memory_space<smem>>, %arg3: memref<1x8x128xf32, #tpu.memory_space<vmem>>, %arg4: memref<1x8x128xf32, #tpu.memory_space<vmem>>, %arg5: memref<1x8x128xf32, #tpu.memory_space<vmem>>) attributes {dimension_semantics = [#tpu.dimension_semantics<parallel>, #tpu.dimension_semantics<parallel>], iteration_bounds = array<i64: 2, 1>, scalar_prefetch = 1 : i64, scratch_operands = 0 : i64, tpu.core_type = #tpu.core_type<tc>, window_params = [{transform_indices = @transform_0, window_bounds = array<i64: 1, 8, 128>}, {transform_indices = @transform_1, window_bounds = array<i64: 1, 8, 128>}, {transform_indices = @transform_2, window_bounds = array<i64: 1, 8, 128>}]} {
    %c0 = arith.constant 0 : index
    %0 = arith.index_cast %arg0 : i32 to index
    %1 = memref.load %arg2[%c0, %0] : memref<2x2xf32, #tpu.memory_space<smem>>
    %c1 = arith.constant 1 : index
    %2 = arith.index_cast %arg0 : i32 to index
    %3 = memref.load %arg2[%c1, %2] : memref<2x2xf32, #tpu.memory_space<smem>>
    %c0_0 = arith.constant 0 : index
    %c0_1 = arith.constant 0 : index
    %c0_2 = arith.constant 0 : index
    %4 = vector.load %arg3[%c0_0, %c0_1, %c0_2] : memref<1x8x128xf32, #tpu.memory_space<vmem>>, vector<1x8x128xf32>
    %5 = vector.broadcast %1 : f32 to vector<1x8x128xf32>
    %6 = arith.mulf %4, %5 : vector<1x8x128xf32>
    %c0_3 = arith.constant 0 : index
    %c0_4 = arith.constant 0 : index
    %c0_5 = arith.constant 0 : index
    %7 = vector.load %arg4[%c0_3, %c0_4, %c0_5] : memref<1x8x128xf32, #tpu.memory_space<vmem>>, vector<1x8x128xf32>
    %8 = vector.broadcast %3 : f32 to vector<1x8x128xf32>
    %9 = arith.mulf %8, %7 : vector<1x8x128xf32>
    %10 = arith.addf %6, %9 : vector<1x8x128xf32>
    %c0_6 = arith.constant 0 : index
    %c0_7 = arith.constant 0 : index
    %c0_8 = arith.constant 0 : index
    %11 = vector.load %arg5[%c0_6, %c0_7, %c0_8] : memref<1x8x128xf32, #tpu.memory_space<vmem>>, vector<1x8x128xf32>
    tpu.vector_store %arg5[%c0_6, %c0_7, %c0_8], %10 {strides = array<i32>} : memref<1x8x128xf32, #tpu.memory_space<vmem>>, vector<1x8x128xf32>,
    return
  }
  func.func @transform_0(%arg0: i32, %arg1: i32, %arg2: memref<2x2xf32, #tpu.memory_space<smem>>) -> (i32, i32, i32) {
    %c0_i32 = arith.constant 0 : i32
    %c0_i32_0 = arith.constant 0 : i32
    return %arg0, %arg1, %c0_i32 : i32, i32, i32
  }
  func.func @transform_1(%arg0: i32, %arg1: i32, %arg2: memref<2x2xf32, #tpu.memory_space<smem>>) -> (i32, i32, i32) {
    %c0_i32 = arith.constant 0 : i32
    %c0_i32_0 = arith.constant 0 : i32
    return %arg0, %arg1, %c0_i32 : i32, i32, i32
  }
  func.func @transform_2(%arg0: i32, %arg1: i32, %arg2: memref<2x2xf32, #tpu.memory_space<smem>>) -> (i32, i32, i32) {
    %c0_i32 = arith.constant 0 : i32
    %c0_i32_0 = arith.constant 0 : i32
    return %arg0, %arg1, %c0_i32 : i32, i32, i32
  }
}

</mosaic_0001>

<bundles_post_ra>
// kernel: tpu_custom_call.1
= control target key start
LH: loop header
LB: loop body
LE: loop exit
PB: predicated region body
PF: predicated region fallthrough
CT: control target
= control target key end

     0   :  { %s863_s0 = inlined_call_operand.hbm [shape: f32[2,2], index: 0, kind: input, shape index: {}]   ;;  %s864_s1 = inlined_call_operand.hbm [shape: f32[2,8,128], index: 1, kind: input, shape index: {}]   ;;  %s865_s2 = inlined_call_operand.hbm [shape: f32[2,8,128], index: 2, kind: input, shape index: {}]   ;;  %s866_s3 = inlined_call_operand.hbm [shape: f32[2,8,128], index: 3, kind: output, shape index: {}]  }
   0x1   :  { %s444_s14 = scalar_lea.hbm %s863_s0, 32 }
   0x2   :  { %p445_p0 = scmp.ne.s32.totalorder %s863_s0, %s444_s14  ;;  %p448_p1 = scmp.lt.u32.totalorder %s444_s14, %s863_s0 }
   0x4   :  { %p450_p2 = pnand %p448_p1, %p445_p0 }
   0x6   :  { %453 = shalt.err (!%p450_p2)  }
   0x7   :  { %s604_s19 = smov [#allocation3]  }
   0x8   :  { %9 = dma.hbm_to_smem %s863_s0, 32, %s604_s19, [#allocation2] }
   0x9   :  { %566 = dma.done.wait [#allocation2], 32 }
   0xa   :  { %567 = vsyncadd [#allocation2], 4294967264 }
   0xb   :  { %11 = sfence }
   0xc   :  { %12 = vsyncpa [#allocation5], 0 }
   0xd   :  { %14 = vsyncpa [#allocation5 + $0x1], 0 }
   0xe   :  { %15 = vsyncpa [#allocation8], 0 }
   0xf   :  { %17 = vsyncpa [#allocation8 + $0x1], 0 }
  0x10   :  { %18 = vsyncpa [#allocation6], 0 }
  0x11   :  { %20 = vsyncpa [#allocation6 + $0x1], 0  ;;  %s640_s22 = smov 0   ;;  %s642_s23 = smov 0  }
  0x12   :  { %s644_s24 = smov 0   ;;  %s646_s25 = smov 0  }
  0x13   :  { %s648_s26 = smov 0   ;;  %s650_s0 = smov 0  }
  0x14 LB: > { %s357_s27 = sadd.s32 4294967295, %s602_s0   ;;  %s358_s28 = sadd.s32 4294967294, %s602_s0   ;;  %s602_s0 = sphi %s650_s0, %s26_s0   ;;  %s598_s26 = sphi %s648_s26, %s886_s26   ;;  %s594_s25 = sphi %s646_s25, %s885_s25   ;;  %s590_s24 = sphi %s644_s24, %s884_s24   ;;  %s586_s23 = sphi %s642_s23, %s883_s23   ;;  %s582_s22 = sphi %s640_s22, %s882_s22  }
  0x15   : > { %s38_s29 = sadd.s32 1, %s598_s26  ;;  %s47_s30 = sadd.s32 1, %s590_s24 }
  0x16   : > { %p40_p3 = scmp.ge.s32.totalorder %s38_s29, 2  ;;  %p54_p4 = scmp.ne.s32.totalorder %s590_s24, %s586_s23 }
  0x17   : > { %p55_p5 = scmp.eq.s32.totalorder %s602_s0, 0  ;;  %p60_p6 = scmp.ne.s32.totalorder %s586_s23, %s582_s22 }
  0x18   : > { %s888_s29 = smov (%p40_p3, %s38_s29), 0  ;;  %p61_p8 = scmp.eq.s32.totalorder %s357_s27, 0 }
  0x19   : > { %p681_p7 = por %p55_p5, %p54_p4  ;;  %s42_s5 = ssub.s32 %s598_s26, %s888_s29 }
  0x1a   : > { %p114_p9 = scmp.eq.s32.totalorder %s357_s27, 1  ;;  %p45_p10 = scmp.eq.s32.totalorder %s42_s5, 0 }
  0x1b   : > { %p687_p11 = por %p61_p8, %p60_p6  ;;  %p120_p13 = scmp.eq.s32.totalorder %s358_s28, 1 }
  0x1c   : > { %p691_p12 = por %p114_p9, %p54_p4  ;;  %p393_p2 = scmp.lt.s32.totalorder %s602_s0, 2 }
  0x1d   : > { %s870_s6 = scalar_select %p687_p11, 1, 0 }
  0x1e   : > { %s871_s7 = scalar_select %p691_p12, 1, 0 }
  0x1f   : > { %s696_s8 = scalar_select %p45_p10, %s590_s24, %s47_s30  }
  0x20   : > { %p698_p0 = por %p120_p13, %p60_p6  ;;  %s705_s10 = sand.u32 1, %s590_s24  }
  0x21   : > { %s361_s11 = sshll.u32 %s705_s10, 3  ;;  %s362_s12 = sshll.u32 %s598_s26, 7 }
  0x22   : > { %s872_s9 = scalar_select %p698_p0, 1, 0 }
  0x23   : > { %s714_s15 = scalar_lea.hbm %s864_s1, %s362_s12  ;;  %s144_s16 = scalar_lea.vmem [#allocation4], %s361_s11 }
  0x24   : > { %s152_s17 = sshll.u32 %s144_s16, 4  ;;  %p722_p3 = pnand %p393_p2, %p681_p7  ;;  %s718_s17 = int_to_ptr.vmem [resolvable:$true] %s152_s17 }
  0x25   : > { %s141_s19 = scalar_lea.sflag [#allocation5], %s705_s10  ;;  %s454_s20 = scalar_lea.hbm %s714_s15, 128 }
  0x26   : > { %p455_p6 = scmp.ne.s32.totalorder %s714_s15, %s454_s20  ;;  %p456_p8 = pneg %p722_p3 }
  0x27   : > { %s459_s28 = scalar_lea.hbm %s864_s1, 256  ;;  %p460_p7 = scmp.lt.u32.totalorder %s714_s15, %s864_s1 }
  0x28   : > { %p457_p9 = pnand %p456_p8, %p455_p6  ;;  %p461_p13 = scmp.lt.u32.totalorder %s459_s28, %s454_s20 }
  0x29   : > { %p463_p1 = scmp.lt.u32.totalorder %s454_s20, %s714_s15 }
  0x2a   : > { %p458_p10 = pneg %p457_p9  ;;  %p462_p2 = por %p461_p13, %p460_p7 }
  0x2c   : > { %p464_p4 = por %p463_p1, %p462_p2 }
  0x2e   : > { %p465_p5 = pnand %p464_p4, %p458_p10 }
  0x30   : > { %468 = shalt.err (!%p465_p5)
}
  0x31   : > { %s469_s5 = scalar_lea.vmem %s718_s17, 128  ;;  %s605_s13 = smov [#allocation4]  }
  0x32   : > { %p470_p6 = scmp.ne.s32.totalorder %s718_s17, %s469_s5  ;;  %s474_s14 = sshll.u32 %s605_s13, 4  ;;  %s475_s14 = int_to_ptr.vmem [resolvable:$false] %s474_s14 }
  0x33   : > { %s476_s16 = scalar_lea.vmem %s475_s14, 256  ;;  %p477_p12 = scmp.lt.s32.totalorder %s718_s17, %s475_s14 }
  0x34   : > { %p472_p9 = pnand %p470_p6, %p456_p8  ;;  %p478_p7 = scmp.lt.s32.totalorder %s476_s16, %s469_s5 }
  0x36   : > { %p473_p0 = pneg %p472_p9  ;;  %p479_p13 = por %p478_p7, %p477_p12 }
  0x38   : > { %p480_p1 = pnand %p479_p13, %p473_p0 }
  0x3a   : > { %483 = shalt.err (!%p480_p1)
}
  0x3b   : > { %385 = dma.hbm_to_vmem [thread:$0]  (!%p722_p3), %s714_s15, 128, %s718_s17, %s141_s19  }
  0x3c   : > { %p874_p4 = scmp.lt.s32.totalorder %s602_s0, 3  ;;  %p875_p5 = scmp.ge.s32.totalorder %s602_s0, 1 }
  0x3d   : > { %s767_s28 = scalar_lea.hbm %s865_s2, %s362_s12  ;;  %s163_s30 = scalar_lea.vmem [#allocation7], %s361_s11 }
  0x3e   : > { %p758_p10 = pnand %p875_p5, %p874_p4  ;;  %s171_s4 = sshll.u32 %s163_s30, 4  ;;  %s172_s4 = int_to_ptr.vmem [resolvable:$true] %s171_s4 }
  0x3f   : > { %s160_s15 = scalar_lea.sflag [#allocation8], %s705_s10  ;;  %s484_s17 = scalar_lea.hbm %s767_s28, 128 }
  0x40   : > { %s876_s20 = scalar_select %p758_p10, 1, 0 }
  0x41   : > { %p485_p12 = scmp.ne.s32.totalorder %s767_s28, %s484_s17  ;;  %s489_s12 = scalar_lea.hbm %s865_s2, 256 }
  0x42   : > { %p490_p6 = scmp.lt.u32.totalorder %s767_s28, %s865_s2  ;;  %p491_p9 = scmp.lt.u32.totalorder %s489_s12, %s484_s17 }
  0x43   : > { %p487_p0 = pnand %p485_p12, %p456_p8  ;;  %p493_p13 = scmp.lt.u32.totalorder %s484_s17, %s767_s28 }
  0x44   : > { %p492_p7 = por %p491_p9, %p490_p6 }
  0x45   : > { %p488_p2 = pneg %p487_p0 }
  0x46   : > { %p494_p1 = por %p493_p13, %p492_p7 }
  0x48   : > { %p495_p4 = pnand %p494_p1, %p488_p2 }
  0x4a   : > { %498 = shalt.err (!%p495_p4)
}
  0x4b   : > { %s499_s10 = scalar_lea.vmem %s172_s4, 128  ;;  %s606_s11 = smov [#allocation7]  }
  0x4c   : > { %p500_p5 = scmp.ne.s32.totalorder %s172_s4, %s499_s10  ;;  %s504_s16 = sshll.u32 %s606_s11, 4  ;;  %s505_s16 = int_to_ptr.vmem [resolvable:$false] %s504_s16 }
  0x4d   : > { %s506_s21 = scalar_lea.vmem %s505_s16, 256  ;;  %p507_p11 = scmp.lt.s32.totalorder %s172_s4, %s505_s16 }
  0x4e   : > { %p502_p12 = pnand %p500_p5, %p456_p8  ;;  %p508_p10 = scmp.lt.s32.totalorder %s506_s21, %s499_s10 }
  0x50   : > { %p503_p0 = pneg %p502_p12  ;;  %p509_p6 = por %p508_p10, %p507_p11 }
  0x52   : > { %p510_p9 = pnand %p509_p6, %p503_p0 }
  0x54   : > { %513 = shalt.err (!%p510_p9)
}
  0x55   : > { %388 = dma.hbm_to_vmem [thread:$0]  (!%p722_p3), %s767_s28, 128, %s172_s4, %s160_s15  }
  0x56   : > { %p877_p2 = scmp.ne.s32.totalorder %s876_s20, 0 }
  0x57   : > { %s794_s27 = sand.u32 (!%p877_p2), 1, %s586_s23   ;;  %p878_p8 = scmp.ne.s32.totalorder (!%p877_p2), %s870_s6, 0 }
  0x58   : > { %180 = sbr.rel (%p877_p2) target bundleno = 127 (0x7f), region = 28  ;;  %s366_s30 = sshll.u32 (!%p877_p2), %s794_s27, 3 }
  0x59   : > { %s183_s17 = scalar_lea.sflag (!%p877_p2), [#allocation5], %s794_s27  ;;  %s186_s19 = scalar_lea.vmem (!%p877_p2), [#allocation4], %s366_s30 }
  0x5f   : > { %569 = dma.done.wait (%p878_p8), %s183_s17, 128  }
  0x60   : > { %571 = vsyncadd (%p878_p8), %s183_s17, 4294967168  ;;  %s192_s18 = scalar_lea.sflag [#allocation8], %s794_s27  ;;  %s195_s28 = scalar_lea.vmem [#allocation7], %s366_s30 }
  0x61   : > { %573 = dma.done.wait (%p878_p8), %s192_s18, 128  }
  0x62   : > { %575 = vsyncadd (%p878_p8), %s192_s18, 4294967168  ;;  %s222_s20 = sshra.s32 %s594_s25, 7  ;;  %s221_s4 = sld [smem:[#allocation3 + %s594_s25]]  ;;  %v230_v0 = vld [vmem:[%s186_s19] sm:$0xff]  ;;  %v233_v2 = vld [vmem:[%s195_s28] sm:$0xff] }
  0x63   : > { %s374_s15 = sshll.u32 %s222_s20, 7  ;;  %s227_s12 = sand.u32 127, %s594_s25 }
  0x64   : > { %s375_s5 = sadd.s32 128, %s374_s15  ;;  %s220_s10 = scalar_lea.vmem [#allocation9], %s366_s30 }
  0x65   : > { %s228_s13 = sadd.s32 %s375_s5, %s227_s12  ;;  %s253_s6 = sshll.u32 %s220_s10, 4  ;;  %s811_s6 = int_to_ptr.vmem [resolvable:$true] %s253_s6 }
  0x66   : > { %s229_s14 = sld [smem:[#allocation3 + %s228_s13]]  ;;  %s371_s11 = sshll.u32 %s594_s25, 7 }
  0x67   : > { %s816_s17 = scalar_lea.hbm %s866_s3, %s371_s11  ;;  %s239_s19 = scalar_lea.sflag [#allocation6], %s794_s27 }
  0x68   : > { %v231_v1 = vstv %s221_s4  ;;  %s514_s18 = scalar_lea.vmem %s811_s6, 128  ;;  %p879_p3 = scmp.ne.s32.totalorder %s871_s7, 0 }
  0x69   : > { %v232_v3 = vmul.f32 %v231_v1, %v230_v0  ;;  %p515_p11 = scmp.ne.s32.totalorder %s811_s6, %s514_s18  ;;  %s607_s25 = smov [#allocation9]  }
  0x6a   : > { %s518_s30 = sshll.u32 %s607_s25, 4  ;;  %s519_s30 = int_to_ptr.vmem [resolvable:$false] %s518_s30 }
  0x6b   : > { %p516_p10 = pnand %p515_p11, %p879_p3  ;;  %s520_s28 = scalar_lea.vmem %s519_s30, 256 }
  0x6c   : > { %v234_v4 = vstv %s229_s14  ;;  %p521_p13 = scmp.lt.s32.totalorder %s811_s6, %s519_s30  ;;  %p522_p1 = scmp.lt.s32.totalorder %s520_s28, %s514_s18 }
  0x6d   : > { %v235_v5 = vmul.f32 %v234_v4, %v233_v2  ;;  %p517_p7 = pneg %p516_p10 }
  0x6e   : > { %p523_p4 = por %p522_p1, %p521_p13 }
  0x6f   : > { %v236_v6 = vadd.f32 %v235_v5, %v232_v3 }
  0x70   : > { %p524_p5 = pnand %p523_p4, %p517_p7 }
  0x71   : > { %237 = vst [vmem:[%s220_s10] sm:$0xff] %v236_v6 }
  0x72   : > { %527 = shalt.err (!%p524_p5)
}
  0x73   : > { %s528_s27 = scalar_lea.hbm %s816_s17, 128  ;;  %s532_s15 = scalar_lea.hbm %s866_s3, 256 }
  0x74   : > { %p529_p12 = scmp.ne.s32.totalorder %s816_s17, %s528_s27  ;;  %p533_p9 = scmp.lt.u32.totalorder %s816_s17, %s866_s3 }
  0x75   : > { %p534_p2 = scmp.lt.u32.totalorder %s532_s15, %s528_s27  ;;  %p536_p11 = scmp.lt.u32.totalorder %s528_s27, %s816_s17 }
  0x76   : > { %p530_p0 = pnand %p529_p12, %p879_p3 }
  0x77   : > { %p535_p8 = por %p534_p2, %p533_p9 }
  0x78   : > { %p531_p6 = pneg %p530_p0 }
  0x79   : > { %p537_p10 = por %p536_p11, %p535_p8 }
  0x7b   : > { %p538_p7 = pnand %p537_p10, %p531_p6 }
  0x7d   : > { %541 = shalt.err (!%p538_p7)
}
  0x7e   : > { %380 = dma.vmem_to_hbm [thread:$0]  (%p879_p3), %s811_s6, 128, %s816_s17, %s239_s19  }
  0x7f PF: > { %s265_s13 = sand.u32 1, %s582_s22   ;;  %p880_p13 = scmp.ne.s32.totalorder %s872_s9, 0 }
  0x80   : > { %p881_p1 = scmp.ge.s32.totalorder %s602_s0, 2  ;;  %s266_s14 = scalar_lea.sflag [#allocation6], %s265_s13 }
  0x82   : > { %p390_p4 = pnand %p881_p1, %p880_p13 }
  0x84   : > { %577 = dma.done.wait (!%p390_p4), %s266_s14, 128  }
  0x85   : > { %579 = vsyncadd (!%p390_p4), %s266_s14, 4294967168  ;;  %s26_s0 = sadd.s32 1, %s602_s0   ;;  %s882_s22 = smov %s586_s23 }
  0x86   : > { %p23_p5 = scmp.ge.s32.totalorder %s26_s0, 4   ;;  %s883_s23 = smov %s590_s24 }
  0x87   : > { %s884_s24 = smov %s696_s8  ;;  %s885_s25 = smov %s598_s26 }
  0x88   : > { %s886_s26 = smov %s888_s29  ;;  %25 = sbr.rel (!%p23_p5) target bundleno = 20 (0x14), region = 86 }
  0x8f   :  { %271 = vsyncpa [#allocation5], 1 }
  0x90   :  { %273 = vsyncpa [#allocation5 + $0x1], 1 }
  0x91   :  { %274 = vsyncpa [#allocation8], 1 }
  0x92   :  { %276 = vsyncpa [#allocation8 + $0x1], 1 }
  0x93   :  { %277 = vsyncpa [#allocation6], 1 }
  0x94   :  { %279 = vsyncpa [#allocation6 + $0x1], 1 }

</bundles_post_ra>
